<compile_context>
chip_gen: v7x
topology: tpu7x:2x2x1
jax: 0.10.0
libtpu: 0.0.40
codegen_flags: <defaults>
</compile_context>

<pallas_src>
import jax
import jax.numpy as jnp
from jax import lax
from jax.experimental import pallas as pl
from jax.experimental.pallas import tpu as pltpu

_LANE = 128


def _round_up(x, m):
    return (x + m - 1) // m * m


def _cdiv(a, b):
    return -(-a // b)


def _pick_tile_and_grid(bp, g):
    """Pick (tile_p, grid, padded_bp) for the flattened B*P lane axis."""
    bp_lane = _round_up(max(bp, 1), _LANE)

    # Double-buffered per-lane-column VMEM bytes with (sublane, 128) padding:
    #   stats bf16: 20 features pad to 32 sublanes per game (bf16 tile = (16,128))
    #   gw    f32 : G pads to a multiple of 8 sublanes
    #   out   f32 : 4 pads to 8 sublanes
    per_col = (2 * (g * 32 * 2)               # stats blocks (double-buffered)
               + 2 * (_round_up(g, 8) * 4)    # game-weight blocks
               + 2 * (8 * 4))                 # output blocks
    budget = 20 << 20                         # headroom under the 32 MiB limit
    cap = max(_LANE, min(8192, budget // per_col) // _LANE * _LANE)

    n = _cdiv(bp_lane, cap)
    if bp_lane >= 4 * _LANE:
        # >= 2 balanced steps so both v7x TensorCores get work under
        # dimension_semantics=("parallel",); take an even step count when it
        # costs no extra lane padding.
        n = max(n, 2)
        if n % 2:
            n_even = n + 1
            if (_round_up(_cdiv(bp_lane, n_even), _LANE) * n_even
                    <= _round_up(_cdiv(bp_lane, n), _LANE) * n):
                n = n_even

    tile = _round_up(_cdiv(bp_lane, n), _LANE)
    grid = _cdiv(bp_lane, tile)
    return tile, grid, tile * grid


def mlp_pool_kernel(stats_ref, gw_ref, w1_ref, b1_ref, w2_ref, b2_ref,
                    w3_ref, b3_ref, out_ref):
    # stats_ref: (G, F, TP) bf16   gw_ref: (G, TP) f32   out_ref: (4, TP) f32
    # w*: bf16 (out, in)           b*: f32 (out, 1); all lane-dense on TP.
    G = stats_ref.shape[0]
    TP = out_ref.shape[1]

    w1 = w1_ref[...]
    b1 = b1_ref[...]
    w2 = w2_ref[...]
    b2 = b2_ref[...]
    w3 = w3_ref[...]
    b3 = b3_ref[...]

    def one_game(g, acc, den):
        x = stats_ref[g]                                   # (F, TP)  bf16
        gw = gw_ref[pl.ds(g, 1), :]                        # (1, TP)  f32

        h = jnp.dot(w1, x, preferred_element_type=jnp.float32) + b1
        h = jnp.maximum(h, 0.0).astype(jnp.bfloat16)       # (16, TP)
        h = jnp.dot(w2, h, preferred_element_type=jnp.float32) + b2
        h = jnp.maximum(h, 0.0).astype(jnp.bfloat16)       # (12, TP)
        h = jnp.dot(w3, h, preferred_element_type=jnp.float32) + b3
        h = jnp.maximum(h, 0.0)                            # (4, TP)  f32

        return acc + h * gw, den + gw

    acc = jnp.zeros((4, TP), jnp.float32)
    den = jnp.zeros((1, TP), jnp.float32)

    if G <= 8:
        # Small G: static unroll, LLO scheduler sees everything.
        for g in range(G):
            acc, den = one_game(g, acc, den)
    else:
        # Large G: fori_loop bounds live ranges of the per-game temporaries.
        def body(g, carry):
            return one_game(g, *carry)
        acc, den = lax.fori_loop(0, G, body, (acc, den), unroll=2)

    inv = pl.reciprocal(den + 0.001, approx=True)          # EUP slot, ~free
    out_ref[...] = acc * inv


def player_rating_forward(player_stats, game_weight, params):
    B, P, G, F = player_stats.shape
    assert F == 20, "PlayerRatingModel expects 20 input features"
    BP = B * P

    tile_p, grid, bp_pad = _pick_tile_and_grid(BP, G)

    # Feature-major relayout (wrapper / XLA side): cast to bf16 first so the
    # transpose moves half the bytes; under jit XLA fuses cast+transpose+pad.
    # TODO(synk): emitting (G, F, B*P) feature-major directly from the producer
    # would remove this extra HBM round trip entirely.
    stats_t = jnp.transpose(
        player_stats.astype(jnp.bfloat16).reshape(BP, G, F), (1, 2, 0))  # (G,F,BP)
    gw_t = jnp.transpose(game_weight.reshape(BP, G), (1, 0))             # (G,BP) f32
    if bp_pad != BP:
        pad = bp_pad - BP
        stats_t = jnp.pad(stats_t, ((0, 0), (0, 0), (0, pad)))
        gw_t = jnp.pad(gw_t, ((0, 0), (0, pad)))

    w1, b1, w2, b2, w3, b3 = params
    w1 = w1.astype(jnp.bfloat16)
    w2 = w2.astype(jnp.bfloat16)
    w3 = w3.astype(jnp.bfloat16)

    flops = 2 * bp_pad * G * (F * 16 + 16 * 12 + 12 * 4)
    bytes_accessed = (2 * bp_pad * G * F     # bf16 stats
                      + 4 * bp_pad * G       # f32 game weights
                      + 4 * bp_pad * 4)      # f32 output

    out = pl.pallas_call(
        mlp_pool_kernel,
        out_shape=jax.ShapeDtypeStruct((4, bp_pad), jnp.float32),
        grid_spec=pltpu.PrefetchScalarGridSpec(
            num_scalar_prefetch=0,
            grid=(grid,),
            in_specs=[
                pl.BlockSpec((G, F, tile_p), lambda i: (0, 0, i)),
                pl.BlockSpec((G, tile_p), lambda i: (0, i)),
                pl.BlockSpec((16, F), lambda i: (0, 0)),
                pl.BlockSpec((16, 1), lambda i: (0, 0)),
                pl.BlockSpec((12, 16), lambda i: (0, 0)),
                pl.BlockSpec((12, 1), lambda i: (0, 0)),
                pl.BlockSpec((4, 12), lambda i: (0, 0)),
                pl.BlockSpec((4, 1), lambda i: (0, 0)),
            ],
            out_specs=pl.BlockSpec((4, tile_p), lambda i: (0, i)),
        ),
        compiler_params=pltpu.CompilerParams(
            dimension_semantics=("parallel",),
            vmem_limit_bytes=32 * 1024 * 1024),
        cost_estimate=pl.CostEstimate(
            flops=flops, transcendentals=bp_pad, bytes_accessed=bytes_accessed),
    )(stats_t, gw_t, w1, b1, w2, b2, w3, b3)

    # (4, bp_pad) -> (B, P, 4), dropping padded lanes.
    return jnp.transpose(out[:, :BP], (1, 0)).reshape(B, P, 4)


def init_params(key):
    """nn.Linear-style init; weights kept in PyTorch's (out, in) layout."""
    dims = [(20, 16), (16, 12), (12, 4)]
    params = []
    for fan_in, fan_out in dims:
        key, kw, kb = jax.random.split(key, 3)
        bound = 1.0 / (fan_in ** 0.5)
        w = jax.random.uniform(kw, (fan_out, fan_in), jnp.float32, -bound, bound)
        b = jax.random.uniform(kb, (fan_out, 1), jnp.float32, -bound, bound)
        params += [w, b]
    return tuple(params)


def reference_forward(player_stats, game_weight, params):
    w1, b1, w2, b2, w3, b3 = params
    h = jnp.maximum(player_stats @ w1.T + b1[:, 0], 0.0)
    h = jnp.maximum(h @ w2.T + b2[:, 0], 0.0)
    h = jnp.maximum(h @ w3.T + b3[:, 0], 0.0)                    # (B, P, G, 4)
    weighted = h * game_weight[..., None]
    return jnp.sum(weighted, axis=2) / (jnp.sum(game_weight, axis=2)[..., None] + 0.001)


if __name__ == "__main__":
    B, P, G, F = 2, 4, 8, 20
    key = jax.random.PRNGKey(0)
    k_stats, k_gw, k_params = jax.random.split(key, 3)

    player_stats = jax.random.normal(k_stats, (B, P, G, F), jnp.float32)
    game_weight = jax.random.uniform(k_gw, (B, P, G), jnp.float32)
    params = init_params(k_params)

    fwd = jax.jit(player_rating_forward)
    out = jax.block_until_ready(fwd(player_stats, game_weight, params))

    ref = reference_forward(player_stats, game_weight, params)
    assert out.shape == (B, P, 4)
    # bf16 matmul operands -> compare against the f32 reference at ~1e-2.
    assert jnp.allclose(out, ref, atol=2e-2, rtol=2e-2), "mismatch vs reference"

    print("KERNEL_OK")
</pallas_src>

<mosaic_0001>
module attributes {stable_mosaic.version = 11 : i64} {
  func.func @mlp_pool_kernel(%arg0: i32, %arg1: memref<8x20x128xbf16, #tpu.memory_space<vmem>>, %arg2: memref<8x128xf32, #tpu.memory_space<vmem>>, %arg3: memref<16x20xbf16, #tpu.memory_space<vmem>>, %arg4: memref<16x1xf32, #tpu.memory_space<vmem>>, %arg5: memref<12x16xbf16, #tpu.memory_space<vmem>>, %arg6: memref<12x1xf32, #tpu.memory_space<vmem>>, %arg7: memref<4x12xbf16, #tpu.memory_space<vmem>>, %arg8: memref<4x1xf32, #tpu.memory_space<vmem>>, %arg9: memref<4x128xf32, #tpu.memory_space<vmem>>) attributes {dimension_semantics = [#tpu.dimension_semantics<parallel>], iteration_bounds = array<i64: 1>, scalar_prefetch = 0 : i64, scratch_operands = 0 : i64, tpu.core_type = #tpu.core_type<tc>, window_params = [{transform_indices = @transform_0, window_bounds = array<i64: 8, 20, 128>}, {transform_indices = @transform_1, window_bounds = array<i64: 8, 128>}, {pipeline_mode = #tpu.pipeline_mode<synchronous>, transform_indices = @transform_2, window_bounds = array<i64: 16, 20>}, {pipeline_mode = #tpu.pipeline_mode<synchronous>, transform_indices = @transform_3, window_bounds = array<i64: 16, 1>}, {pipeline_mode = #tpu.pipeline_mode<synchronous>, transform_indices = @transform_4, window_bounds = array<i64: 12, 16>}, {pipeline_mode = #tpu.pipeline_mode<synchronous>, transform_indices = @transform_5, window_bounds = array<i64: 12, 1>}, {pipeline_mode = #tpu.pipeline_mode<synchronous>, transform_indices = @transform_6, window_bounds = array<i64: 4, 12>}, {pipeline_mode = #tpu.pipeline_mode<synchronous>, transform_indices = @transform_7, window_bounds = array<i64: 4, 1>}, {transform_indices = @transform_8, window_bounds = array<i64: 4, 128>}]} {
    %c0 = arith.constant 0 : index
    %c0_0 = arith.constant 0 : index
    %0 = vector.load %arg3[%c0, %c0_0] : memref<16x20xbf16, #tpu.memory_space<vmem>>, vector<16x20xbf16>
    %c0_1 = arith.constant 0 : index
    %c0_2 = arith.constant 0 : index
    %1 = vector.load %arg4[%c0_1, %c0_2] : memref<16x1xf32, #tpu.memory_space<vmem>>, vector<16x1xf32>
    %c0_3 = arith.constant 0 : index
    %c0_4 = arith.constant 0 : index
    %2 = vector.load %arg5[%c0_3, %c0_4] : memref<12x16xbf16, #tpu.memory_space<vmem>>, vector<12x16xbf16>
    %c0_5 = arith.constant 0 : index
    %c0_6 = arith.constant 0 : index
    %3 = vector.load %arg6[%c0_5, %c0_6] : memref<12x1xf32, #tpu.memory_space<vmem>>, vector<12x1xf32>
    %c0_7 = arith.constant 0 : index
    %c0_8 = arith.constant 0 : index
    %4 = vector.load %arg7[%c0_7, %c0_8] : memref<4x12xbf16, #tpu.memory_space<vmem>>, vector<4x12xbf16>
    %c0_9 = arith.constant 0 : index
    %c0_10 = arith.constant 0 : index
    %5 = vector.load %arg8[%c0_9, %c0_10] : memref<4x1xf32, #tpu.memory_space<vmem>>, vector<4x1xf32>
    %cst = arith.constant 0.000000e+00 : f32
    %6 = vector.broadcast %cst : f32 to vector<4x128xf32>
    %cst_11 = arith.constant 0.000000e+00 : f32
    %7 = vector.broadcast %cst_11 : f32 to vector<1x128xf32>
    %c0_12 = arith.constant 0 : index
    %c0_13 = arith.constant 0 : index
    %c0_14 = arith.constant 0 : index
    %8 = vector.load %arg1[%c0_12, %c0_13, %c0_14] : memref<8x20x128xbf16, #tpu.memory_space<vmem>>, vector<1x20x128xbf16>
    %9 = vector.shape_cast %8 : vector<1x20x128xbf16> to vector<20x128xbf16>
    %c0_15 = arith.constant 0 : index
    %c0_16 = arith.constant 0 : index
    %10 = vector.load %arg2[%c0_15, %c0_16] : memref<8x128xf32, #tpu.memory_space<vmem>>, vector<1x128xf32>
    %cst_17 = arith.constant dense<0.000000e+00> : vector<16x128xf32>
    %11 = tpu.matmul %0, %9, %cst_17 {dimension_numbers = #tpu.dot_dimension_numbers<[1], [0], [0], [1], [0, 0, 1, 1], [], []>} : vector<16x20xbf16>, vector<20x128xbf16>, vector<16x128xf32> -> vector<16x128xf32>
    %12 = vector.broadcast %1 : vector<16x1xf32> to vector<16x128xf32>
    %13 = arith.addf %11, %12 : vector<16x128xf32>
    %cst_18 = arith.constant 0.000000e+00 : f32
    %14 = vector.broadcast %cst_18 : f32 to vector<16x128xf32>
    %15 = arith.maximumf %13, %14 : vector<16x128xf32>
    %16 = arith.truncf %15 : vector<16x128xf32> to vector<16x128xbf16>
    %cst_19 = arith.constant dense<0.000000e+00> : vector<12x128xf32>
    %17 = tpu.matmul %2, %16, %cst_19 {dimension_numbers = #tpu.dot_dimension_numbers<[1], [0], [0], [1], [0, 0, 1, 1], [], []>} : vector<12x16xbf16>, vector<16x128xbf16>, vector<12x128xf32> -> vector<12x128xf32>
    %18 = vector.broadcast %3 : vector<12x1xf32> to vector<12x128xf32>
    %19 = arith.addf %17, %18 : vector<12x128xf32>
    %cst_20 = arith.constant 0.000000e+00 : f32
    %20 = vector.broadcast %cst_20 : f32 to vector<12x128xf32>
    %21 = arith.maximumf %19, %20 : vector<12x128xf32>
    %22 = arith.truncf %21 : vector<12x128xf32> to vector<12x128xbf16>
    %cst_21 = arith.constant dense<0.000000e+00> : vector<4x128xf32>
    %23 = tpu.matmul %4, %22, %cst_21 {dimension_numbers = #tpu.dot_dimension_numbers<[1], [0], [0], [1], [0, 0, 1, 1], [], []>} : vector<4x12xbf16>, vector<12x128xbf16>, vector<4x128xf32> -> vector<4x128xf32>
    %24 = vector.broadcast %5 : vector<4x1xf32> to vector<4x128xf32>
    %25 = arith.addf %23, %24 : vector<4x128xf32>
    %cst_22 = arith.constant 0.000000e+00 : f32
    %26 = vector.broadcast %cst_22 : f32 to vector<4x128xf32>
    %27 = arith.maximumf %25, %26 : vector<4x128xf32>
    %28 = vector.broadcast %10 : vector<1x128xf32> to vector<4x128xf32>
    %29 = arith.mulf %27, %28 : vector<4x128xf32>
    %30 = arith.addf %6, %29 : vector<4x128xf32>
    %31 = arith.addf %7, %10 : vector<1x128xf32>
    %c1 = arith.constant 1 : index
    %c0_23 = arith.constant 0 : index
    %c0_24 = arith.constant 0 : index
    %32 = vector.load %arg1[%c1, %c0_23, %c0_24] : memref<8x20x128xbf16, #tpu.memory_space<vmem>>, vector<1x20x128xbf16>
    %33 = vector.shape_cast %32 : vector<1x20x128xbf16> to vector<20x128xbf16>
    %c1_25 = arith.constant 1 : index
    %c0_26 = arith.constant 0 : index
    %34 = vector.load %arg2[%c1_25, %c0_26] : memref<8x128xf32, #tpu.memory_space<vmem>>, vector<1x128xf32>
    %cst_27 = arith.constant dense<0.000000e+00> : vector<16x128xf32>
    %35 = tpu.matmul %0, %33, %cst_27 {dimension_numbers = #tpu.dot_dimension_numbers<[1], [0], [0], [1], [0, 0, 1, 1], [], []>} : vector<16x20xbf16>, vector<20x128xbf16>, vector<16x128xf32> -> vector<16x128xf32>
    %36 = vector.broadcast %1 : vector<16x1xf32> to vector<16x128xf32>
    %37 = arith.addf %35, %36 : vector<16x128xf32>
    %cst_28 = arith.constant 0.000000e+00 : f32
    %38 = vector.broadcast %cst_28 : f32 to vector<16x128xf32>
    %39 = arith.maximumf %37, %38 : vector<16x128xf32>
    %40 = arith.truncf %39 : vector<16x128xf32> to vector<16x128xbf16>
    %cst_29 = arith.constant dense<0.000000e+00> : vector<12x128xf32>
    %41 = tpu.matmul %2, %40, %cst_29 {dimension_numbers = #tpu.dot_dimension_numbers<[1], [0], [0], [1], [0, 0, 1, 1], [], []>} : vector<12x16xbf16>, vector<16x128xbf16>, vector<12x128xf32> -> vector<12x128xf32>
    %42 = vector.broadcast %3 : vector<12x1xf32> to vector<12x128xf32>
    %43 = arith.addf %41, %42 : vector<12x128xf32>
    %cst_30 = arith.constant 0.000000e+00 : f32
    %44 = vector.broadcast %cst_30 : f32 to vector<12x128xf32>
    %45 = arith.maximumf %43, %44 : vector<12x128xf32>
    %46 = arith.truncf %45 : vector<12x128xf32> to vector<12x128xbf16>
    %cst_31 = arith.constant dense<0.000000e+00> : vector<4x128xf32>
    %47 = tpu.matmul %4, %46, %cst_31 {dimension_numbers = #tpu.dot_dimension_numbers<[1], [0], [0], [1], [0, 0, 1, 1], [], []>} : vector<4x12xbf16>, vector<12x128xbf16>, vector<4x128xf32> -> vector<4x128xf32>
    %48 = vector.broadcast %5 : vector<4x1xf32> to vector<4x128xf32>
    %49 = arith.addf %47, %48 : vector<4x128xf32>
    %cst_32 = arith.constant 0.000000e+00 : f32
    %50 = vector.broadcast %cst_32 : f32 to vector<4x128xf32>
    %51 = arith.maximumf %49, %50 : vector<4x128xf32>
    %52 = vector.broadcast %34 : vector<1x128xf32> to vector<4x128xf32>
    %53 = arith.mulf %51, %52 : vector<4x128xf32>
    %54 = arith.addf %30, %53 : vector<4x128xf32>
    %55 = arith.addf %31, %34 : vector<1x128xf32>
    %c2 = arith.constant 2 : index
    %c0_33 = arith.constant 0 : index
    %c0_34 = arith.constant 0 : index
    %56 = vector.load %arg1[%c2, %c0_33, %c0_34] : memref<8x20x128xbf16, #tpu.memory_space<vmem>>, vector<1x20x128xbf16>
    %57 = vector.shape_cast %56 : vector<1x20x128xbf16> to vector<20x128xbf16>
    %c2_35 = arith.constant 2 : index
    %c0_36 = arith.constant 0 : index
    %58 = vector.load %arg2[%c2_35, %c0_36] : memref<8x128xf32, #tpu.memory_space<vmem>>, vector<1x128xf32>
    %cst_37 = arith.constant dense<0.000000e+00> : vector<16x128xf32>
    %59 = tpu.matmul %0, %57, %cst_37 {dimension_numbers = #tpu.dot_dimension_numbers<[1], [0], [0], [1], [0, 0, 1, 1], [], []>} : vector<16x20xbf16>, vector<20x128xbf16>, vector<16x128xf32> -> vector<16x128xf32>
    %60 = vector.broadcast %1 : vector<16x1xf32> to vector<16x128xf32>
    %61 = arith.addf %59, %60 : vector<16x128xf32>
    %cst_38 = arith.constant 0.000000e+00 : f32
    %62 = vector.broadcast %cst_38 : f32 to vector<16x128xf32>
    %63 = arith.maximumf %61, %62 : vector<16x128xf32>
    %64 = arith.truncf %63 : vector<16x128xf32> to vector<16x128xbf16>
    %cst_39 = arith.constant dense<0.000000e+00> : vector<12x128xf32>
    %65 = tpu.matmul %2, %64, %cst_39 {dimension_numbers = #tpu.dot_dimension_numbers<[1], [0], [0], [1], [0, 0, 1, 1], [], []>} : vector<12x16xbf16>, vector<16x128xbf16>, vector<12x128xf32> -> vector<12x128xf32>
    %66 = vector.broadcast %3 : vector<12x1xf32> to vector<12x128xf32>
    %67 = arith.addf %65, %66 : vector<12x128xf32>
    %cst_40 = arith.constant 0.000000e+00 : f32
    %68 = vector.broadcast %cst_40 : f32 to vector<12x128xf32>
    %69 = arith.maximumf %67, %68 : vector<12x128xf32>
    %70 = arith.truncf %69 : vector<12x128xf32> to vector<12x128xbf16>
    %cst_41 = arith.constant dense<0.000000e+00> : vector<4x128xf32>
    %71 = tpu.matmul %4, %70, %cst_41 {dimension_numbers = #tpu.dot_dimension_numbers<[1], [0], [0], [1], [0, 0, 1, 1], [], []>} : vector<4x12xbf16>, vector<12x128xbf16>, vector<4x128xf32> -> vector<4x128xf32>
    %72 = vector.broadcast %5 : vector<4x1xf32> to vector<4x128xf32>
    %73 = arith.addf %71, %72 : vector<4x128xf32>
    %cst_42 = arith.constant 0.000000e+00 : f32
    %74 = vector.broadcast %cst_42 : f32 to vector<4x128xf32>
    %75 = arith.maximumf %73, %74 : vector<4x128xf32>
    %76 = vector.broadcast %58 : vector<1x128xf32> to vector<4x128xf32>
    %77 = arith.mulf %75, %76 : vector<4x128xf32>
    %78 = arith.addf %54, %77 : vector<4x128xf32>
    %79 = arith.addf %55, %58 : vector<1x128xf32>
    %c3 = arith.constant 3 : index
    %c0_43 = arith.constant 0 : index
    %c0_44 = arith.constant 0 : index
    %80 = vector.load %arg1[%c3, %c0_43, %c0_44] : memref<8x20x128xbf16, #tpu.memory_space<vmem>>, vector<1x20x128xbf16>
    %81 = vector.shape_cast %80 : vector<1x20x128xbf16> to vector<20x128xbf16>
    %c3_45 = arith.constant 3 : index
    %c0_46 = arith.constant 0 : index
    %82 = vector.load %arg2[%c3_45, %c0_46] : memref<8x128xf32, #tpu.memory_space<vmem>>, vector<1x128xf32>
    %cst_47 = arith.constant dense<0.000000e+00> : vector<16x128xf32>
    %83 = tpu.matmul %0, %81, %cst_47 {dimension_numbers = #tpu.dot_dimension_numbers<[1], [0], [0], [1], [0, 0, 1, 1], [], []>} : vector<16x20xbf16>, vector<20x128xbf16>, vector<16x128xf32> -> vector<16x128xf32>
    %84 = vector.broadcast %1 : vector<16x1xf32> to vector<16x128xf32>
    %85 = arith.addf %83, %84 : vector<16x128xf32>
    %cst_48 = arith.constant 0.000000e+00 : f32
    %86 = vector.broadcast %cst_48 : f32 to vector<16x128xf32>
    %87 = arith.maximumf %85, %86 : vector<16x128xf32>
    %88 = arith.truncf %87 : vector<16x128xf32> to vector<16x128xbf16>
    %cst_49 = arith.constant dense<0.000000e+00> : vector<12x128xf32>
    %89 = tpu.matmul %2, %88, %cst_49 {dimension_numbers = #tpu.dot_dimension_numbers<[1], [0], [0], [1], [0, 0, 1, 1], [], []>} : vector<12x16xbf16>, vector<16x128xbf16>, vector<12x128xf32> -> vector<12x128xf32>
    %90 = vector.broadcast %3 : vector<12x1xf32> to vector<12x128xf32>
    %91 = arith.addf %89, %90 : vector<12x128xf32>
    %cst_50 = arith.constant 0.000000e+00 : f32
    %92 = vector.broadcast %cst_50 : f32 to vector<12x128xf32>
    %93 = arith.maximumf %91, %92 : vector<12x128xf32>
    %94 = arith.truncf %93 : vector<12x128xf32> to vector<12x128xbf16>
    %cst_51 = arith.constant dense<0.000000e+00> : vector<4x128xf32>
    %95 = tpu.matmul %4, %94, %cst_51 {dimension_numbers = #tpu.dot_dimension_numbers<[1], [0], [0], [1], [0, 0, 1, 1], [], []>} : vector<4x12xbf16>, vector<12x128xbf16>, vector<4x128xf32> -> vector<4x128xf32>
    %96 = vector.broadcast %5 : vector<4x1xf32> to vector<4x128xf32>
    %97 = arith.addf %95, %96 : vector<4x128xf32>
    %cst_52 = arith.constant 0.000000e+00 : f32
    %98 = vector.broadcast %cst_52 : f32 to vector<4x128xf32>
    %99 = arith.maximumf %97, %98 : vector<4x128xf32>
    %100 = vector.broadcast %82 : vector<1x128xf32> to vector<4x128xf32>
    %101 = arith.mulf %99, %100 : vector<4x128xf32>
    %102 = arith.addf %78, %101 : vector<4x128xf32>
    %103 = arith.addf %79, %82 : vector<1x128xf32>
    %c4 = arith.constant 4 : index
    %c0_53 = arith.constant 0 : index
    %c0_54 = arith.constant 0 : index
    %104 = vector.load %arg1[%c4, %c0_53, %c0_54] : memref<8x20x128xbf16, #tpu.memory_space<vmem>>, vector<1x20x128xbf16>
    %105 = vector.shape_cast %104 : vector<1x20x128xbf16> to vector<20x128xbf16>
    %c4_55 = arith.constant 4 : index
    %c0_56 = arith.constant 0 : index
    %106 = vector.load %arg2[%c4_55, %c0_56] : memref<8x128xf32, #tpu.memory_space<vmem>>, vector<1x128xf32>
    %cst_57 = arith.constant dense<0.000000e+00> : vector<16x128xf32>
    %107 = tpu.matmul %0, %105, %cst_57 {dimension_numbers = #tpu.dot_dimension_numbers<[1], [0], [0], [1], [0, 0, 1, 1], [], []>} : vector<16x20xbf16>, vector<20x128xbf16>, vector<16x128xf32> -> vector<16x128xf32>
    %108 = vector.broadcast %1 : vector<16x1xf32> to vector<16x128xf32>
    %109 = arith.addf %107, %108 : vector<16x128xf32>
    %cst_58 = arith.constant 0.000000e+00 : f32
    %110 = vector.broadcast %cst_58 : f32 to vector<16x128xf32>
    %111 = arith.maximumf %109, %110 : vector<16x128xf32>
    %112 = arith.truncf %111 : vector<16x128xf32> to vector<16x128xbf16>
    %cst_59 = arith.constant dense<0.000000e+00> : vector<12x128xf32>
    %113 = tpu.matmul %2, %112, %cst_59 {dimension_numbers = #tpu.dot_dimension_numbers<[1], [0], [0], [1], [0, 0, 1, 1], [], []>} : vector<12x16xbf16>, vector<16x128xbf16>, vector<12x128xf32> -> vector<12x128xf32>
    %114 = vector.broadcast %3 : vector<12x1xf32> to vector<12x128xf32>
    %115 = arith.addf %113, %114 : vector<12x128xf32>
    %cst_60 = arith.constant 0.000000e+00 : f32
    %116 = vector.broadcast %cst_60 : f32 to vector<12x128xf32>
    %117 = arith.maximumf %115, %116 : vector<12x128xf32>
    %118 = arith.truncf %117 : vector<12x128xf32> to vector<12x128xbf16>
    %cst_61 = arith.constant dense<0.000000e+00> : vector<4x128xf32>
    %119 = tpu.matmul %4, %118, %cst_61 {dimension_numbers = #tpu.dot_dimension_numbers<[1], [0], [0], [1], [0, 0, 1, 1], [], []>} : vector<4x12xbf16>, vector<12x128xbf16>, vector<4x128xf32> -> vector<4x128xf32>
    %120 = vector.broadcast %5 : vector<4x1xf32> to vector<4x128xf32>
    %121 = arith.addf %119, %120 : vector<4x128xf32>
    %cst_62 = arith.constant 0.000000e+00 : f32
    %122 = vector.broadcast %cst_62 : f32 to vector<4x128xf32>
    %123 = arith.maximumf %121, %122 : vector<4x128xf32>
    %124 = vector.broadcast %106 : vector<1x128xf32> to vector<4x128xf32>
    %125 = arith.mulf %123, %124 : vector<4x128xf32>
    %126 = arith.addf %102, %125 : vector<4x128xf32>
    %127 = arith.addf %103, %106 : vector<1x128xf32>
    %c5 = arith.constant 5 : index
    %c0_63 = arith.constant 0 : index
    %c0_64 = arith.constant 0 : index
    %128 = vector.load %arg1[%c5, %c0_63, %c0_64] : memref<8x20x128xbf16, #tpu.memory_space<vmem>>, vector<1x20x128xbf16>
    %129 = vector.shape_cast %128 : vector<1x20x128xbf16> to vector<20x128xbf16>
    %c5_65 = arith.constant 5 : index
    %c0_66 = arith.constant 0 : index
    %130 = vector.load %arg2[%c5_65, %c0_66] : memref<8x128xf32, #tpu.memory_space<vmem>>, vector<1x128xf32>
    %cst_67 = arith.constant dense<0.000000e+00> : vector<16x128xf32>
    %131 = tpu.matmul %0, %129, %cst_67 {dimension_numbers = #tpu.dot_dimension_numbers<[1], [0], [0], [1], [0, 0, 1, 1], [], []>} : vector<16x20xbf16>, vector<20x128xbf16>, vector<16x128xf32> -> vector<16x128xf32>
    %132 = vector.broadcast %1 : vector<16x1xf32> to vector<16x128xf32>
    %133 = arith.addf %131, %132 : vector<16x128xf32>
    %cst_68 = arith.constant 0.000000e+00 : f32
    %134 = vector.broadcast %cst_68 : f32 to vector<16x128xf32>
    %135 = arith.maximumf %133, %134 : vector<16x128xf32>
    %136 = arith.truncf %135 : vector<16x128xf32> to vector<16x128xbf16>
    %cst_69 = arith.constant dense<0.000000e+00> : vector<12x128xf32>
    %137 = tpu.matmul %2, %136, %cst_69 {dimension_numbers = #tpu.dot_dimension_numbers<[1], [0], [0], [1], [0, 0, 1, 1], [], []>} : vector<12x16xbf16>, vector<16x128xbf16>, vector<12x128xf32> -> vector<12x128xf32>
    %138 = vector.broadcast %3 : vector<12x1xf32> to vector<12x128xf32>
    %139 = arith.addf %137, %138 : vector<12x128xf32>
    %cst_70 = arith.constant 0.000000e+00 : f32
    %140 = vector.broadcast %cst_70 : f32 to vector<12x128xf32>
    %141 = arith.maximumf %139, %140 : vector<12x128xf32>
    %142 = arith.truncf %141 : vector<12x128xf32> to vector<12x128xbf16>
    %cst_71 = arith.constant dense<0.000000e+00> : vector<4x128xf32>
    %143 = tpu.matmul %4, %142, %cst_71 {dimension_numbers = #tpu.dot_dimension_numbers<[1], [0], [0], [1], [0, 0, 1, 1], [], []>} : vector<4x12xbf16>, vector<12x128xbf16>, vector<4x128xf32> -> vector<4x128xf32>
    %144 = vector.broadcast %5 : vector<4x1xf32> to vector<4x128xf32>
    %145 = arith.addf %143, %144 : vector<4x128xf32>
    %cst_72 = arith.constant 0.000000e+00 : f32
    %146 = vector.broadcast %cst_72 : f32 to vector<4x128xf32>
    %147 = arith.maximumf %145, %146 : vector<4x128xf32>
    %148 = vector.broadcast %130 : vector<1x128xf32> to vector<4x128xf32>
    %149 = arith.mulf %147, %148 : vector<4x128xf32>
    %150 = arith.addf %126, %149 : vector<4x128xf32>
    %151 = arith.addf %127, %130 : vector<1x128xf32>
    %c6 = arith.constant 6 : index
    %c0_73 = arith.constant 0 : index
    %c0_74 = arith.constant 0 : index
    %152 = vector.load %arg1[%c6, %c0_73, %c0_74] : memref<8x20x128xbf16, #tpu.memory_space<vmem>>, vector<1x20x128xbf16>
    %153 = vector.shape_cast %152 : vector<1x20x128xbf16> to vector<20x128xbf16>
    %c6_75 = arith.constant 6 : index
    %c0_76 = arith.constant 0 : index
    %154 = vector.load %arg2[%c6_75, %c0_76] : memref<8x128xf32, #tpu.memory_space<vmem>>, vector<1x128xf32>
    %cst_77 = arith.constant dense<0.000000e+00> : vector<16x128xf32>
    %155 = tpu.matmul %0, %153, %cst_77 {dimension_numbers = #tpu.dot_dimension_numbers<[1], [0], [0], [1], [0, 0, 1, 1], [], []>} : vector<16x20xbf16>, vector<20x128xbf16>, vector<16x128xf32> -> vector<16x128xf32>
    %156 = vector.broadcast %1 : vector<16x1xf32> to vector<16x128xf32>
    %157 = arith.addf %155, %156 : vector<16x128xf32>
    %cst_78 = arith.constant 0.000000e+00 : f32
    %158 = vector.broadcast %cst_78 : f32 to vector<16x128xf32>
    %159 = arith.maximumf %157, %158 : vector<16x128xf32>
    %160 = arith.truncf %159 : vector<16x128xf32> to vector<16x128xbf16>
    %cst_79 = arith.constant dense<0.000000e+00> : vector<12x128xf32>
    %161 = tpu.matmul %2, %160, %cst_79 {dimension_numbers = #tpu.dot_dimension_numbers<[1], [0], [0], [1], [0, 0, 1, 1], [], []>} : vector<12x16xbf16>, vector<16x128xbf16>, vector<12x128xf32> -> vector<12x128xf32>
    %162 = vector.broadcast %3 : vector<12x1xf32> to vector<12x128xf32>
    %163 = arith.addf %161, %162 : vector<12x128xf32>
    %cst_80 = arith.constant 0.000000e+00 : f32
    %164 = vector.broadcast %cst_80 : f32 to vector<12x128xf32>
    %165 = arith.maximumf %163, %164 : vector<12x128xf32>
    %166 = arith.truncf %165 : vector<12x128xf32> to vector<12x128xbf16>
    %cst_81 = arith.constant dense<0.000000e+00> : vector<4x128xf32>
    %167 = tpu.matmul %4, %166, %cst_81 {dimension_numbers = #tpu.dot_dimension_numbers<[1], [0], [0], [1], [0, 0, 1, 1], [], []>} : vector<4x12xbf16>, vector<12x128xbf16>, vector<4x128xf32> -> vector<4x128xf32>
    %168 = vector.broadcast %5 : vector<4x1xf32> to vector<4x128xf32>
    %169 = arith.addf %167, %168 : vector<4x128xf32>
    %cst_82 = arith.constant 0.000000e+00 : f32
    %170 = vector.broadcast %cst_82 : f32 to vector<4x128xf32>
    %171 = arith.maximumf %169, %170 : vector<4x128xf32>
    %172 = vector.broadcast %154 : vector<1x128xf32> to vector<4x128xf32>
    %173 = arith.mulf %171, %172 : vector<4x128xf32>
    %174 = arith.addf %150, %173 : vector<4x128xf32>
    %175 = arith.addf %151, %154 : vector<1x128xf32>
    %c7 = arith.constant 7 : index
    %c0_83 = arith.constant 0 : index
    %c0_84 = arith.constant 0 : index
    %176 = vector.load %arg1[%c7, %c0_83, %c0_84] : memref<8x20x128xbf16, #tpu.memory_space<vmem>>, vector<1x20x128xbf16>
    %177 = vector.shape_cast %176 : vector<1x20x128xbf16> to vector<20x128xbf16>
    %c7_85 = arith.constant 7 : index
    %c0_86 = arith.constant 0 : index
    %178 = vector.load %arg2[%c7_85, %c0_86] : memref<8x128xf32, #tpu.memory_space<vmem>>, vector<1x128xf32>
    %cst_87 = arith.constant dense<0.000000e+00> : vector<16x128xf32>
    %179 = tpu.matmul %0, %177, %cst_87 {dimension_numbers = #tpu.dot_dimension_numbers<[1], [0], [0], [1], [0, 0, 1, 1], [], []>} : vector<16x20xbf16>, vector<20x128xbf16>, vector<16x128xf32> -> vector<16x128xf32>
    %180 = vector.broadcast %1 : vector<16x1xf32> to vector<16x128xf32>
    %181 = arith.addf %179, %180 : vector<16x128xf32>
    %cst_88 = arith.constant 0.000000e+00 : f32
    %182 = vector.broadcast %cst_88 : f32 to vector<16x128xf32>
    %183 = arith.maximumf %181, %182 : vector<16x128xf32>
    %184 = arith.truncf %183 : vector<16x128xf32> to vector<16x128xbf16>
    %cst_89 = arith.constant dense<0.000000e+00> : vector<12x128xf32>
    %185 = tpu.matmul %2, %184, %cst_89 {dimension_numbers = #tpu.dot_dimension_numbers<[1], [0], [0], [1], [0, 0, 1, 1], [], []>} : vector<12x16xbf16>, vector<16x128xbf16>, vector<12x128xf32> -> vector<12x128xf32>
    %186 = vector.broadcast %3 : vector<12x1xf32> to vector<12x128xf32>
    %187 = arith.addf %185, %186 : vector<12x128xf32>
    %cst_90 = arith.constant 0.000000e+00 : f32
    %188 = vector.broadcast %cst_90 : f32 to vector<12x128xf32>
    %189 = arith.maximumf %187, %188 : vector<12x128xf32>
    %190 = arith.truncf %189 : vector<12x128xf32> to vector<12x128xbf16>
    %cst_91 = arith.constant dense<0.000000e+00> : vector<4x128xf32>
    %191 = tpu.matmul %4, %190, %cst_91 {dimension_numbers = #tpu.dot_dimension_numbers<[1], [0], [0], [1], [0, 0, 1, 1], [], []>} : vector<4x12xbf16>, vector<12x128xbf16>, vector<4x128xf32> -> vector<4x128xf32>
    %192 = vector.broadcast %5 : vector<4x1xf32> to vector<4x128xf32>
    %193 = arith.addf %191, %192 : vector<4x128xf32>
    %cst_92 = arith.constant 0.000000e+00 : f32
    %194 = vector.broadcast %cst_92 : f32 to vector<4x128xf32>
    %195 = arith.maximumf %193, %194 : vector<4x128xf32>
    %196 = vector.broadcast %178 : vector<1x128xf32> to vector<4x128xf32>
    %197 = arith.mulf %195, %196 : vector<4x128xf32>
    %198 = arith.addf %174, %197 : vector<4x128xf32>
    %199 = arith.addf %175, %178 : vector<1x128xf32>
    %cst_93 = arith.constant 1.000000e-03 : f32
    %200 = vector.broadcast %cst_93 : f32 to vector<1x128xf32>
    %201 = arith.addf %199, %200 : vector<1x128xf32>
    %202 = tpu.reciprocal %201 {approx = true} : vector<1x128xf32> -> vector<1x128xf32>
    %203 = vector.broadcast %202 : vector<1x128xf32> to vector<4x128xf32>
    %204 = arith.mulf %198, %203 : vector<4x128xf32>
    %c0_94 = arith.constant 0 : index
    %c0_95 = arith.constant 0 : index
    %205 = vector.load %arg9[%c0_94, %c0_95] : memref<4x128xf32, #tpu.memory_space<vmem>>, vector<4x128xf32>
    tpu.vector_store %arg9[%c0_94, %c0_95], %204 {strides = array<i32>} : memref<4x128xf32, #tpu.memory_space<vmem>>, vector<4x128xf32>,
    return
  }
  func.func @transform_0(%arg0: i32) -> (i32, i32, i32) {
    %c0_i32 = arith.constant 0 : i32
    %c0_i32_0 = arith.constant 0 : i32
    %c0_i32_1 = arith.constant 0 : i32
    return %c0_i32, %c0_i32_0, %arg0 : i32, i32, i32
  }
  func.func @transform_1(%arg0: i32) -> (i32, i32) {
    %c0_i32 = arith.constant 0 : i32
    %c0_i32_0 = arith.constant 0 : i32
    return %c0_i32, %arg0 : i32, i32
  }
  func.func @transform_2(%arg0: i32) -> (i32, i32) {
    %c0_i32 = arith.constant 0 : i32
    %c0_i32_0 = arith.constant 0 : i32
    %c0_i32_1 = arith.constant 0 : i32
    return %c0_i32, %c0_i32_0 : i32, i32
  }
  func.func @transform_3(%arg0: i32) -> (i32, i32) {
    %c0_i32 = arith.constant 0 : i32
    %c0_i32_0 = arith.constant 0 : i32
    %c0_i32_1 = arith.constant 0 : i32
    return %c0_i32, %c0_i32_0 : i32, i32
  }
  func.func @transform_4(%arg0: i32) -> (i32, i32) {
    %c0_i32 = arith.constant 0 : i32
    %c0_i32_0 = arith.constant 0 : i32
    %c0_i32_1 = arith.constant 0 : i32
    return %c0_i32, %c0_i32_0 : i32, i32
  }
  func.func @transform_5(%arg0: i32) -> (i32, i32) {
    %c0_i32 = arith.constant 0 : i32
    %c0_i32_0 = arith.constant 0 : i32
    %c0_i32_1 = arith.constant 0 : i32
    return %c0_i32, %c0_i32_0 : i32, i32
  }
  func.func @transform_6(%arg0: i32) -> (i32, i32) {
    %c0_i32 = arith.constant 0 : i32
    %c0_i32_0 = arith.constant 0 : i32
    %c0_i32_1 = arith.constant 0 : i32
    return %c0_i32, %c0_i32_0 : i32, i32
  }
  func.func @transform_7(%arg0: i32) -> (i32, i32) {
    %c0_i32 = arith.constant 0 : i32
    %c0_i32_0 = arith.constant 0 : i32
    %c0_i32_1 = arith.constant 0 : i32
    return %c0_i32, %c0_i32_0 : i32, i32
  }
  func.func @transform_8(%arg0: i32) -> (i32, i32) {
    %c0_i32 = arith.constant 0 : i32
    %c0_i32_0 = arith.constant 0 : i32
    return %c0_i32, %arg0 : i32, i32
  }
}

</mosaic_0001>

<bundles_post_ra>
// kernel: player_rating_forward.1
= control target key start
LH: loop header
LB: loop body
LE: loop exit
PB: predicated region body
PF: predicated region fallthrough
CT: control target
= control target key end

     0   :  { %vm72_vm0 = vcmask 1041408   ;;  %v1652_v0 = vmov 0.0   ;;  %vm1653_vm1 = vmmov 0   ;;  %v1654_v3 = vmov 0   ;;  %s2030_s0 = inlined_call_operand.vmem [shape: bf16[8,20,128], index: 0, kind: input, shape index: {}]   ;;  %s2031_s2 = inlined_call_operand.vmem [shape: bf16[16,20], index: 2, kind: input, shape index: {}]   ;;  %s2032_s3 = inlined_call_operand.vmem [shape: f32[16,1], index: 3, kind: input, shape index: {}]   ;;  %s2033_s7 = inlined_call_operand.vmem [shape: f32[4,1], index: 7, kind: input, shape index: {}]   ;;  %s2034_s4 = inlined_call_operand.vmem [shape: bf16[12,16], index: 4, kind: input, shape index: {}]   ;;  %s2035_s5 = inlined_call_operand.vmem [shape: f32[12,1], index: 5, kind: input, shape index: {}]   ;;  %s2036_s6 = inlined_call_operand.vmem [shape: bf16[4,12], index: 6, kind: input, shape index: {}]   ;;  %s2037_s1 = inlined_call_operand.vmem [shape: f32[8,128], index: 1, kind: input, shape index: {}]   ;;  %s2038_s8 = inlined_call_operand.vmem [shape: f32[4,128], index: 8, kind: output, shape index: {}]  }
   0x1   :  { %1467 = vmatprep.subr.bf16.mxu0 %v1652_v0  ;;  %v1632_v1 = vld [vmem:[%s2030_s0] sm:$0xff]   ;;  %1471 = vmatprep.mubr.msk.bf16.mxu0 %vm1653_vm1, %v1652_v0  ;;  %v1633_v2 = vld [vmem:[%s2030_s0 + $0x8] ss:$0 sps:$4 sm:$0x33]   ;;  %v1635_v7 = vld [vmem:[%s2030_s0 + $0xc] sm:$0xff]   ;;  %vm68_vm2 = vcmask 162816  }
   0x2   :  { %1630 = vset.pattern.permute.xlu0 %v1654_v3  ;;  %1475 = vmatprep.subr.bf16.mxu1 %v1652_v0  ;;  %v74_v4 = vsel %vm72_vm0, %v1633_v2, 0  ;;  %v1717_v5 = vld [vmem:[%s2031_s2] sm:$0xff]   ;;  %v1636_v8 = vld [vmem:[%s2030_s0 + $0x14] ss:$0 sps:$4 sm:$0x33]   ;;  %v33_v9 = vld [vmem:[%s2032_s3 + $0x8] sm:$0xff] }
   0x3   :  { %1468 = vmatpush3.bf16.msra.mxu0 %v1632_v1  ;;  %1477 = vmatprep.mubr.msk.bf16.mxu1 %vm1653_vm1, %v1652_v0  ;;  %v32_v6 = vld [vmem:[%s2032_s3] sm:$0xff]  ;;  %v259_v11 = vsel %vm72_vm0, %v1636_v8, 0  ;;  %v37_v13 = vld [vmem:[%s2035_s5 + $0x8] sm:$0xf]  ;;  %vm135_vm3 = vcmask 130048   ;;  %vm192_vm4 = vcmask 1045504  }
   0x4   :  { %1469 = vmatprep.subr.bf16.mxu0 %v1652_v0  ;;  %1631 = vset.pattern.permute.xlu1 %v1654_v3  ;;  %v39_v10 = vld [vmem:[%s2033_s7] sm:$0xf]  ;;  %vm188_vm5 = vcmask 97280   ;;  %v1638_v48 = vld [vmem:[%s2030_s0 + $0x18] sm:$0xff]  }
   0x5   :  { %46 = vperm.xlu0 %1630, %v32_v6   ;;  %v36_v12 = vld [vmem:[%s2035_s5] sm:$0xff] }
   0x6   :  { %122 = vperm.xlu1 %1631, %v36_v12   ;;  %v1761_v26 = vld [vmem:[%s2034_s4] sm:$0x3f]  }
   0x7   :  { %1470 = vmatpush3.bf16.msra.mxu0 %v74_v4  ;;  %v1780_v47 = vld [vmem:[%s2036_s6] sm:$0x3]  ;;  %v1640_v12 = vld [vmem:[%s2030_s0 + $0x24] sm:$0xff]  }
   0x8   :  { %1487 = vmatprep.subr.bf16.mxu0 %v1652_v0  ;;  %v1639_v49 = vld [vmem:[%s2030_s0 + $0x20] ss:$0 sps:$4 sm:$0x33]  }
   0x9   :  { %51 = vperm.xlu0 %1630, %v33_v9   ;;  %v415_v50 = vsel %vm72_vm0, %v1639_v49, 0 }
   0xa   :  { %1472 = vmatmul.mubr.msk.bf16.vlgmr.msra.gmra.mrb[0].mxu0 %vm68_vm2, %v1717_v5  ;;  %127 = vperm.xlu1 %1631, %v37_v13   ;;  %v1641_v13 = vld [vmem:[%s2030_s0 + $0x2c] ss:$0 sps:$4 sm:$0x33]  }
   0xb   :  { %1488 = vmatpush3.bf16.msra.mxu0 %v1635_v7  ;;  %1491 = vmatprep.mubr.msk.bf16.mxu0 %vm1653_vm1, %v1652_v0 }
   0xc   :  { %1489 = vmatprep.subr.bf16.mxu0 %v1652_v0 }
   0xd   :  { %185 = vperm.xlu0 %1630, %v39_v10  }
   0xf   :  { %1490 = vmatpush3.bf16.msra.mxu0 %v259_v11 }
  0x10   :  { %1501 = vmatprep.subr.bf16.mxu0 %v1652_v0 }
  0x12   :  { %1492 = vmatmul.mubr.msk.bf16.vlgmr.msra.gmra.mrb[4].mxu0 %vm68_vm2, %v1717_v5 }
  0x13   :  { %1503 = vmatprep.mubr.msk.bf16.mxu0 %vm1653_vm1, %v1652_v0 }
  0x84   :  { %v1752_v14 = vpop.permute.xlu0 %46 }
  0x85   :  { %v1770_v35 = vpop.permute.xlu1 %122 }
  0x88   :  { %v1755_v18 = vpop.permute.xlu0 %51 }
  0x89   :  { %v1773_v39 = vpop.permute.xlu1 %127 }
  0xdd   :  { %v110_v15 = vpop.f32.mrb[0].mxu0 }
  0xde   :  { %v111_v16 = vadd.f32 %v110_v15, %v1752_v14  ;;  %v1473_v17 = vpop.f32.mrb[1].mxu0  ;;  %v571_v15 = vsel %vm72_vm0, %v1641_v13, 0 }
  0xdf   :  { %v113_v19 = vpop.f32.mrb[2].mxu0 }
  0xe0   :  { %v114_v20 = vadd.f32 %v113_v19, %v1755_v18  ;;  %v1474_v21 = vpop.f32.mrb[3].mxu0  ;;  %v117_v22 = vmax.f32 %v111_v16, 0.0  ;;  %v237_v16 = vlaneseq  ;;  %v1833_v19 = vpop.permute.xlu0 %185 }
  0xe2   :  { %v118_v23 = vmax.f32 %v114_v20, 0.0  ;;  %v238_v17 = vshrl.u32 %v237_v16, 7 }
  0xe4   :  { %v119_v24 = vpack.c.bf16 %v118_v23, %v117_v22  ;;  %v1836_v21 = vsub.s32 0, %v238_v17  ;;  %v1841_v22 = vld [vmem:[%s2037_s1] sm:$0x1]  ;;  %v1846_v23 = vld [vmem:[%s2037_s1 + $0x1] sm:$0x1] }
  0xe5   :  { %v295_v25 = vpop.f32.mrb[4].mxu0 }
  0xe6   :  { %v296_v27 = vadd.f32 %v295_v25, %v1752_v14  ;;  %1476 = vmatpush3.bf16.msra.mxu1 %v119_v24  ;;  %v1493_v28 = vpop.f32.mrb[5].mxu0 }
  0xe7   :  { %v298_v29 = vpop.f32.mrb[6].mxu0  ;;  %1481 = vmatprep.subr.bf16.mxu1 %v1652_v0 }
  0xe8   :  { %v299_v30 = vadd.f32 %v298_v29, %v1755_v18  ;;  %v1494_v31 = vpop.f32.mrb[7].mxu0  ;;  %v302_v32 = vmax.f32 %v296_v27, 0.0  ;;  %v240_v27 = vrot.slane %v1841_v22, %v1836_v21  ;;  %v396_v29 = vrot.slane %v1846_v23, %v1836_v21 }
  0xe9   :  { %1478 = vmatmul.mubr.msk.bf16.vlgmr.msra.gmra.mrb[0].mxu1 %vm135_vm3, %v1761_v26 }
  0xea   :  { %v303_v33 = vmax.f32 %v299_v30, 0.0  ;;  %1483 = vmatprep.mubr.msk.bf16.mxu1 %vm1653_vm1, %v1652_v0 }
  0xec   :  { %v304_v34 = vpack.c.bf16 %v303_v33, %v302_v32 }
 0x1bc   :  { %v173_v36 = vpop.f32.mrb[0].mxu1 }
 0x1bd   :  { %v174_v37 = vadd.f32 %v173_v36, %v1770_v35  ;;  %v1479_v38 = vpop.f32.mrb[1].mxu1 }
 0x1be   :  { %v176_v40 = vpop.f32.mrb[2].mxu1 }
 0x1bf   :  { %v177_v41 = vadd.f32 %v176_v40, %v1773_v39  ;;  %v1480_v42 = vpop.f32.mrb[3].mxu1  ;;  %v180_v43 = vmax.f32 %v174_v37, 0.0 }
 0x1c1   :  { %v181_v44 = vmax.f32 %v177_v41, 0.0 }
 0x1c3   :  { %v182_v45 = vpack.c.bf16 %v181_v44, %v180_v43 }
 0x1c5   :  { %v194_v46 = vsel %vm192_vm4, %v182_v45, 0 }
 0x1c6   :  { %1482 = vmatpush3.bf16.msra.mxu1 %v194_v46 }
 0x1c7   :  { %1495 = vmatprep.subr.bf16.mxu1 %v1652_v0 }
 0x1c9   :  { %1484 = vmatmul.mubr.msk.bf16.vlgmr.msra.gmra.mrb[4].mxu1 %vm188_vm5, %v1780_v47 }
 0x1ca   :  { %1496 = vmatpush3.bf16.msra.mxu1 %v304_v34  ;;  %1497 = vmatprep.mubr.msk.bf16.mxu1 %vm1653_vm1, %v1652_v0 }
 0x1cb   :  { %1507 = vmatprep.subr.bf16.mxu1 %v1652_v0 }
 0x1d1   :  { %1498 = vmatmul.mubr.msk.bf16.vlgmr.msra.gmra.mrb[8].mxu1 %vm135_vm3, %v1761_v26 }
 0x1d2   :  { %1508 = vmatpush3.bf16.msra.mxu1 %v1638_v48  ;;  %1511 = vmatprep.mubr.msk.bf16.mxu1 %vm1653_vm1, %v1652_v0 }
 0x1d3   :  { %1509 = vmatprep.subr.bf16.mxu1 %v1652_v0 }
 0x1d6   :  { %1510 = vmatpush3.bf16.msra.mxu1 %v415_v50 }
 0x1d7   :  { %1521 = vmatprep.subr.bf16.mxu1 %v1652_v0 }
 0x1d9   :  { %1512 = vmatmul.mubr.msk.bf16.vlgmr.msra.gmra.mrb[12].mxu1 %vm68_vm2, %v1717_v5 }
 0x1da   :  { %1523 = vmatprep.mubr.msk.bf16.mxu1 %vm1653_vm1, %v1652_v0 }
 0x29c   :  { %v230_v51 = vpop.f32.mrb[4].mxu1 }
 0x29d   :  { %v1485_v52 = vpop.f32.mrb[5].mxu1  ;;  %v231_v20 = vadd.f32 %v230_v51, %v1833_v19 }
 0x29e   :  { %v233_v53 = vpop.f32.mrb[6].mxu1 }
 0x29f   :  { %v1486_v54 = vpop.f32.mrb[7].mxu1  ;;  %v236_v25 = vmax.f32 %v231_v20, 0.0 }
 0x2a1   :  { %v241_v34 = vmul.f32 %v240_v27, %v236_v25 }
 0x2a4   :  { %v339_v55 = vpop.f32.mrb[8].mxu1 }
 0x2a5   :  { %v340_v56 = vadd.f32 %v339_v55, %v1770_v35  ;;  %v1499_v57 = vpop.f32.mrb[9].mxu1 }
 0x2a6   :  { %v342_v58 = vpop.f32.mrb[10].mxu1 }
 0x2a7   :  { %v343_v59 = vadd.f32 %v342_v58, %v1773_v39  ;;  %v1500_v60 = vpop.f32.mrb[11].mxu1  ;;  %v346_v61 = vmax.f32 %v340_v56, 0.0 }
 0x2a8   :  { %v1643_v60 = vld [vmem:[%s2030_s0 + $0x38] ss:$0 sps:$4 sm:$0x33]  }
 0x2a9   :  { %v347_v62 = vmax.f32 %v343_v59, 0.0  ;;  %v1642_v59 = vld [vmem:[%s2030_s0 + $0x30] sm:$0xff]  }
 0x2ab   :  { %v348_v63 = vpack.c.bf16 %v347_v62, %v346_v61  ;;  %v727_v61 = vsel %vm72_vm0, %v1643_v60, 0  ;;  %v1884_v62 = vld [vmem:[%s2037_s1 + $0x2] sm:$0x1] }
 0x2ac   :  { %v451_v1 = vpop.f32.mrb[12].mxu1 }
 0x2ad   :  { %v452_v2 = vadd.f32 %v451_v1, %v1752_v14  ;;  %v1513_v3 = vpop.f32.mrb[13].mxu1  ;;  %v350_v4 = vsel %vm192_vm4, %v348_v63, 0 }
 0x2ae   :  { %1502 = vmatpush3.bf16.msra.mxu0 %v350_v4  ;;  %v454_v6 = vpop.f32.mrb[14].mxu1 }
 0x2af   :  { %v455_v7 = vadd.f32 %v454_v6, %v1755_v18  ;;  %v1514_v8 = vpop.f32.mrb[15].mxu1  ;;  %1515 = vmatprep.subr.bf16.mxu0 %v1652_v0  ;;  %v458_v9 = vmax.f32 %v452_v2, 0.0  ;;  %v552_v2 = vrot.slane %v1884_v62, %v1836_v21 }
 0x2b1   :  { %v459_v10 = vmax.f32 %v455_v7, 0.0  ;;  %1504 = vmatmul.mubr.msk.bf16.vlgmr.msra.gmra.mrb[8].mxu0 %vm188_vm5, %v1780_v47 }
 0x2b2   :  { %1517 = vmatprep.mubr.msk.bf16.mxu0 %vm1653_vm1, %v1652_v0 }
 0x2b3   :  { %v460_v11 = vpack.c.bf16 %v459_v10, %v458_v9 }
 0x2b5   :  { %1516 = vmatpush3.bf16.msra.mxu0 %v460_v11 }
 0x2b6   :  { %1527 = vmatprep.subr.bf16.mxu0 %v1652_v0 }
 0x2b9   :  { %1518 = vmatmul.mubr.msk.bf16.vlgmr.msra.gmra.mrb[12].mxu0 %vm135_vm3, %v1761_v26 }
 0x2ba   :  { %1528 = vmatpush3.bf16.msra.mxu0 %v1640_v12  ;;  %1531 = vmatprep.mubr.msk.bf16.mxu0 %vm1653_vm1, %v1652_v0 }
 0x2bb   :  { %1529 = vmatprep.subr.bf16.mxu0 %v1652_v0 }
 0x2be   :  { %1530 = vmatpush3.bf16.msra.mxu0 %v571_v15 }
 0x2bf   :  { %1541 = vmatprep.subr.bf16.mxu0 %v1652_v0 }
 0x2c1   :  { %1532 = vmatmul.mubr.msk.bf16.vlgmr.msra.gmra.mrb[16].mxu0 %vm68_vm2, %v1717_v5 }
 0x2c2   :  { %1543 = vmatprep.mubr.msk.bf16.mxu0 %vm1653_vm1, %v1652_v0 }
 0x384   :  { %v386_v24 = vpop.f32.mrb[8].mxu0 }
 0x385   :  { %v387_v28 = vadd.f32 %v386_v24, %v1833_v19  ;;  %v1505_v30 = vpop.f32.mrb[9].mxu0 }
 0x386   :  { %v389_v31 = vpop.f32.mrb[10].mxu0 }
 0x387   :  { %v392_v32 = vmax.f32 %v387_v28, 0.0  ;;  %v1506_v33 = vpop.f32.mrb[11].mxu0 }
 0x389   :  { %v397_v36 = vmul.f32 %v396_v29, %v392_v32 }
 0x38b   :  { %v398_v37 = vadd.f32 %v397_v36, %v241_v34 }
 0x38c   :  { %v495_v38 = vpop.f32.mrb[12].mxu0 }
 0x38d   :  { %v496_v40 = vadd.f32 %v495_v38, %v1770_v35  ;;  %v1519_v41 = vpop.f32.mrb[13].mxu0  ;;  %v1645_v38 = vld [vmem:[%s2030_s0 + $0x44] ss:$0 sps:$4 sm:$0x33]  }
 0x38e   :  { %v498_v42 = vpop.f32.mrb[14].mxu0  ;;  %v1920_v41 = vld [vmem:[%s2037_s1 + $0x3] sm:$0x1] }
 0x38f   :  { %v499_v43 = vadd.f32 %v498_v42, %v1773_v39  ;;  %v1520_v44 = vpop.f32.mrb[15].mxu0  ;;  %v502_v45 = vmax.f32 %v496_v40, 0.0  ;;  %v883_v40 = vsel %vm72_vm0, %v1645_v38, 0 }
 0x390   :  { %v708_v44 = vrot.slane %v1920_v41, %v1836_v21 }
 0x391   :  { %v503_v46 = vmax.f32 %v499_v43, 0.0 }
 0x393   :  { %v504_v48 = vpack.c.bf16 %v503_v46, %v502_v45 }
 0x394   :  { %v607_v49 = vpop.f32.mrb[16].mxu0 }
 0x395   :  { %v608_v50 = vadd.f32 %v607_v49, %v1752_v14  ;;  %v1533_v51 = vpop.f32.mrb[17].mxu0  ;;  %v506_v52 = vsel %vm192_vm4, %v504_v48, 0 }
 0x396   :  { %1522 = vmatpush3.bf16.msra.mxu1 %v506_v52  ;;  %v610_v53 = vpop.f32.mrb[18].mxu0 }
 0x397   :  { %v611_v54 = vadd.f32 %v610_v53, %v1755_v18  ;;  %v1534_v55 = vpop.f32.mrb[19].mxu0  ;;  %1535 = vmatprep.subr.bf16.mxu1 %v1652_v0  ;;  %v614_v56 = vmax.f32 %v608_v50, 0.0 }
 0x399   :  { %v615_v57 = vmax.f32 %v611_v54, 0.0  ;;  %1524 = vmatmul.mubr.msk.bf16.vlgmr.msra.gmra.mrb[16].mxu1 %vm188_vm5, %v1780_v47 }
 0x39a   :  { %1537 = vmatprep.mubr.msk.bf16.mxu1 %vm1653_vm1, %v1652_v0 }
 0x39b   :  { %v616_v58 = vpack.c.bf16 %v615_v57, %v614_v56 }
 0x39d   :  { %1536 = vmatpush3.bf16.msra.mxu1 %v616_v58 }
 0x39e   :  { %1547 = vmatprep.subr.bf16.mxu1 %v1652_v0 }
 0x3a1   :  { %1538 = vmatmul.mubr.msk.bf16.vlgmr.msra.gmra.mrb[20].mxu1 %vm135_vm3, %v1761_v26 }
 0x3a2   :  { %1548 = vmatpush3.bf16.msra.mxu1 %v1642_v59  ;;  %1551 = vmatprep.mubr.msk.bf16.mxu1 %vm1653_vm1, %v1652_v0 }
 0x3a3   :  { %1549 = vmatprep.subr.bf16.mxu1 %v1652_v0 }
 0x3a6   :  { %1550 = vmatpush3.bf16.msra.mxu1 %v727_v61 }
 0x3a7   :  { %1561 = vmatprep.subr.bf16.mxu1 %v1652_v0 }
 0x3a9   :  { %1552 = vmatmul.mubr.msk.bf16.vlgmr.msra.gmra.mrb[24].mxu1 %vm68_vm2, %v1717_v5 }
 0x3aa   :  { %1563 = vmatprep.mubr.msk.bf16.mxu1 %vm1653_vm1, %v1652_v0 }
 0x46c   :  { %v542_v63 = vpop.f32.mrb[16].mxu1 }
 0x46d   :  { %v543_v1 = vadd.f32 %v542_v63, %v1833_v19  ;;  %v1525_v3 = vpop.f32.mrb[17].mxu1 }
 0x46e   :  { %v545_v4 = vpop.f32.mrb[18].mxu1 }
 0x46f   :  { %v548_v6 = vmax.f32 %v543_v1, 0.0  ;;  %v1526_v7 = vpop.f32.mrb[19].mxu1 }
 0x471   :  { %v553_v8 = vmul.f32 %v552_v2, %v548_v6 }
 0x473   :  { %v554_v9 = vadd.f32 %v553_v8, %v398_v37  ;;  %v1644_v37 = vld [vmem:[%s2030_s0 + $0x3c] sm:$0xff]  }
 0x474   :  { %v651_v10 = vpop.f32.mrb[20].mxu1 }
 0x475   :  { %v652_v11 = vadd.f32 %v651_v10, %v1770_v35  ;;  %v1539_v12 = vpop.f32.mrb[21].mxu1  ;;  %v1646_v10 = vld [vmem:[%s2030_s0 + $0x48] sm:$0xff]  }
 0x476   :  { %v654_v13 = vpop.f32.mrb[22].mxu1 }
 0x477   :  { %v655_v15 = vadd.f32 %v654_v13, %v1773_v39  ;;  %v1540_v16 = vpop.f32.mrb[23].mxu1  ;;  %v658_v17 = vmax.f32 %v652_v11, 0.0  ;;  %v1647_v11 = vld [vmem:[%s2030_s0 + $0x50] ss:$0 sps:$4 sm:$0x33]  }
 0x478   :  { %v1039_v12 = vsel %vm72_vm0, %v1647_v11, 0  ;;  %v1956_v13 = vld [vmem:[%s2037_s1 + $0x4] sm:$0x1] }
 0x479   :  { %v659_v20 = vmax.f32 %v655_v15, 0.0 }
 0x47b   :  { %v660_v24 = vpack.c.bf16 %v659_v20, %v658_v17  ;;  %v864_v17 = vrot.slane %v1956_v13, %v1836_v21 }
 0x47c   :  { %v763_v25 = vpop.f32.mrb[24].mxu1 }
 0x47d   :  { %v764_v27 = vadd.f32 %v763_v25, %v1752_v14  ;;  %v1553_v28 = vpop.f32.mrb[25].mxu1  ;;  %v662_v29 = vsel %vm192_vm4, %v660_v24, 0 }
 0x47e   :  { %1542 = vmatpush3.bf16.msra.mxu0 %v662_v29  ;;  %v766_v30 = vpop.f32.mrb[26].mxu1 }
 0x47f   :  { %v767_v31 = vadd.f32 %v766_v30, %v1755_v18  ;;  %v1554_v32 = vpop.f32.mrb[27].mxu1  ;;  %1555 = vmatprep.subr.bf16.mxu0 %v1652_v0  ;;  %v770_v33 = vmax.f32 %v764_v27, 0.0 }
 0x481   :  { %v771_v34 = vmax.f32 %v767_v31, 0.0  ;;  %1544 = vmatmul.mubr.msk.bf16.vlgmr.msra.gmra.mrb[20].mxu0 %vm188_vm5, %v1780_v47 }
 0x482   :  { %1557 = vmatprep.mubr.msk.bf16.mxu0 %vm1653_vm1, %v1652_v0 }
 0x483   :  { %v772_v36 = vpack.c.bf16 %v771_v34, %v770_v33 }
 0x485   :  { %1556 = vmatpush3.bf16.msra.mxu0 %v772_v36 }
 0x486   :  { %1567 = vmatprep.subr.bf16.mxu0 %v1652_v0 }
 0x489   :  { %1558 = vmatmul.mubr.msk.bf16.vlgmr.msra.gmra.mrb[24].mxu0 %vm135_vm3, %v1761_v26 }
 0x48a   :  { %1568 = vmatpush3.bf16.msra.mxu0 %v1644_v37  ;;  %1571 = vmatprep.mubr.msk.bf16.mxu0 %vm1653_vm1, %v1652_v0 }
 0x48b   :  { %1569 = vmatprep.subr.bf16.mxu0 %v1652_v0 }
 0x48e   :  { %1570 = vmatpush3.bf16.msra.mxu0 %v883_v40 }
 0x48f   :  { %1581 = vmatprep.subr.bf16.mxu0 %v1652_v0 }
 0x491   :  { %1572 = vmatmul.mubr.msk.bf16.vlgmr.msra.gmra.mrb[28].mxu0 %vm68_vm2, %v1717_v5 }
 0x492   :  { %1583 = vmatprep.mubr.msk.bf16.mxu0 %vm1653_vm1, %v1652_v0 }
 0x554   :  { %v698_v42 = vpop.f32.mrb[20].mxu0 }
 0x555   :  { %v699_v43 = vadd.f32 %v698_v42, %v1833_v19  ;;  %v1545_v45 = vpop.f32.mrb[21].mxu0 }
 0x556   :  { %v701_v46 = vpop.f32.mrb[22].mxu0 }
 0x557   :  { %v704_v48 = vmax.f32 %v699_v43, 0.0  ;;  %v1546_v49 = vpop.f32.mrb[23].mxu0 }
 0x559   :  { %v709_v50 = vmul.f32 %v708_v44, %v704_v48 }
 0x55b   :  { %v710_v51 = vadd.f32 %v709_v50, %v554_v9 }
 0x55c   :  { %v807_v52 = vpop.f32.mrb[24].mxu0 }
 0x55d   :  { %v808_v53 = vadd.f32 %v807_v52, %v1770_v35  ;;  %v1559_v54 = vpop.f32.mrb[25].mxu0 }
 0x55e   :  { %v810_v55 = vpop.f32.mrb[26].mxu0  ;;  %v1649_v54 = vld [vmem:[%s2030_s0 + $0x5c] ss:$0 sps:$4 sm:$0x33]  }
 0x55f   :  { %v811_v56 = vadd.f32 %v810_v55, %v1773_v39  ;;  %v1560_v57 = vpop.f32.mrb[27].mxu0  ;;  %v814_v58 = vmax.f32 %v808_v53, 0.0  ;;  %v1648_v53 = vld [vmem:[%s2030_s0 + $0x54] sm:$0xff]   ;;  %v1195_v55 = vsel %vm72_vm0, %v1649_v54, 0 }
 0x561   :  { %v815_v59 = vmax.f32 %v811_v56, 0.0  ;;  %v872_v56 = vld [vmem:[%s2037_s1 + $0x5] sm:$0x1] }
 0x563   :  { %v816_v60 = vpack.c.bf16 %v815_v59, %v814_v58  ;;  %v1020_v59 = vrot.slane %v872_v56, %v1836_v21 }
 0x564   :  { %v919_v61 = vpop.f32.mrb[28].mxu0 }
 0x565   :  { %v920_v63 = vadd.f32 %v919_v61, %v1752_v14  ;;  %v1573_v1 = vpop.f32.mrb[29].mxu0  ;;  %v818_v2 = vsel %vm192_vm4, %v816_v60, 0 }
 0x566   :  { %1562 = vmatpush3.bf16.msra.mxu1 %v818_v2  ;;  %v922_v3 = vpop.f32.mrb[30].mxu0 }
 0x567   :  { %v923_v4 = vadd.f32 %v922_v3, %v1755_v18  ;;  %v1574_v6 = vpop.f32.mrb[31].mxu0  ;;  %1575 = vmatprep.subr.bf16.mxu1 %v1652_v0  ;;  %v926_v7 = vmax.f32 %v920_v63, 0.0 }
 0x569   :  { %v927_v8 = vmax.f32 %v923_v4, 0.0  ;;  %1564 = vmatmul.mubr.msk.bf16.vlgmr.msra.gmra.mrb[28].mxu1 %vm188_vm5, %v1780_v47 }
 0x56a   :  { %1577 = vmatprep.mubr.msk.bf16.mxu1 %vm1653_vm1, %v1652_v0 }
 0x56b   :  { %v928_v9 = vpack.c.bf16 %v927_v8, %v926_v7 }
 0x56d   :  { %1576 = vmatpush3.bf16.msra.mxu1 %v928_v9 }
 0x56e   :  { %1587 = vmatprep.subr.bf16.mxu1 %v1652_v0 }
 0x571   :  { %1578 = vmatmul.mubr.msk.bf16.vlgmr.msra.gmra.mrb[32].mxu1 %vm135_vm3, %v1761_v26 }
 0x572   :  { %1588 = vmatpush3.bf16.msra.mxu1 %v1646_v10  ;;  %1591 = vmatprep.mubr.msk.bf16.mxu1 %vm1653_vm1, %v1652_v0 }
 0x573   :  { %1589 = vmatprep.subr.bf16.mxu1 %v1652_v0 }
 0x576   :  { %1590 = vmatpush3.bf16.msra.mxu1 %v1039_v12 }
 0x577   :  { %1601 = vmatprep.subr.bf16.mxu1 %v1652_v0 }
 0x579   :  { %1592 = vmatmul.mubr.msk.bf16.vlgmr.msra.gmra.mrb[36].mxu1 %vm68_vm2, %v1717_v5 }
 0x57a   :  { %1603 = vmatprep.mubr.msk.bf16.mxu1 %vm1653_vm1, %v1652_v0 }
 0x63c   :  { %v854_v15 = vpop.f32.mrb[28].mxu1 }
 0x63d   :  { %v855_v16 = vadd.f32 %v854_v15, %v1833_v19  ;;  %v1565_v20 = vpop.f32.mrb[29].mxu1 }
 0x63e   :  { %v857_v24 = vpop.f32.mrb[30].mxu1 }
 0x63f   :  { %v860_v25 = vmax.f32 %v855_v16, 0.0  ;;  %v1566_v27 = vpop.f32.mrb[31].mxu1 }
 0x641   :  { %v865_v28 = vmul.f32 %v864_v17, %v860_v25 }
 0x643   :  { %v866_v29 = vadd.f32 %v865_v28, %v710_v51 }
 0x644   :  { %v963_v30 = vpop.f32.mrb[32].mxu1 }
 0x645   :  { %v964_v31 = vadd.f32 %v963_v30, %v1770_v35  ;;  %v1579_v32 = vpop.f32.mrb[33].mxu1 }
 0x646   :  { %v966_v33 = vpop.f32.mrb[34].mxu1 }
 0x647   :  { %v967_v34 = vadd.f32 %v966_v33, %v1773_v39  ;;  %v1580_v36 = vpop.f32.mrb[35].mxu1  ;;  %v970_v37 = vmax.f32 %v964_v31, 0.0 }
 0x649   :  { %v971_v38 = vmax.f32 %v967_v34, 0.0 }
 0x64b   :  { %v972_v40 = vpack.c.bf16 %v971_v38, %v970_v37 }
 0x64c   :  { %v1075_v42 = vpop.f32.mrb[36].mxu1 }
 0x64d   :  { %v1076_v43 = vadd.f32 %v1075_v42, %v1752_v14  ;;  %v1593_v44 = vpop.f32.mrb[37].mxu1  ;;  %v974_v45 = vsel %vm192_vm4, %v972_v40, 0 }
 0x64e   :  { %1582 = vmatpush3.bf16.msra.mxu0 %v974_v45  ;;  %v1078_v46 = vpop.f32.mrb[38].mxu1 }
 0x64f   :  { %v1079_v48 = vadd.f32 %v1078_v46, %v1755_v18  ;;  %v1594_v49 = vpop.f32.mrb[39].mxu1  ;;  %1595 = vmatprep.subr.bf16.mxu0 %v1652_v0  ;;  %v1082_v50 = vmax.f32 %v1076_v43, 0.0 }
 0x651   :  { %v1083_v51 = vmax.f32 %v1079_v48, 0.0  ;;  %1584 = vmatmul.mubr.msk.bf16.vlgmr.msra.gmra.mrb[32].mxu0 %vm188_vm5, %v1780_v47 }
 0x652   :  { %1597 = vmatprep.mubr.msk.bf16.mxu0 %vm1653_vm1, %v1652_v0 }
 0x653   :  { %v1084_v52 = vpack.c.bf16 %v1083_v51, %v1082_v50  ;;  %v399_v51 = vadd.f32 %v1846_v23, %v1841_v22 }
 0x655   :  { %1596 = vmatpush3.bf16.msra.mxu0 %v1084_v52  ;;  %v555_v52 = vadd.f32 %v1884_v62, %v399_v51 }
 0x656   :  { %1607 = vmatprep.subr.bf16.mxu0 %v1652_v0 }
 0x659   :  { %1598 = vmatmul.mubr.msk.bf16.vlgmr.msra.gmra.mrb[36].mxu0 %vm135_vm3, %v1761_v26 }
 0x65a   :  { %1608 = vmatpush3.bf16.msra.mxu0 %v1648_v53  ;;  %1611 = vmatprep.mubr.msk.bf16.mxu0 %vm1653_vm1, %v1652_v0 }
 0x65b   :  { %1609 = vmatprep.subr.bf16.mxu0 %v1652_v0 }
 0x65e   :  { %1610 = vmatpush3.bf16.msra.mxu0 %v1195_v55  ;;  %v1184_v55 = vld [vmem:[%s2037_s1 + $0x7] sm:$0x1] }
 0x65f   :  { %1621 = vmatprep.subr.bf16.mxu0 %v1652_v0  ;;  %v1332_v22 = vrot.slane %v1184_v55, %v1836_v21 }
 0x661   :  { %1612 = vmatmul.mubr.msk.bf16.vlgmr.msra.gmra.mrb[40].mxu0 %vm68_vm2, %v1717_v5 }
 0x662   :  { %1623 = vmatprep.mubr.msk.bf16.mxu0 %vm1653_vm1, %v1652_v0 }
 0x724   :  { %v1010_v57 = vpop.f32.mrb[32].mxu0 }
 0x725   :  { %v1011_v58 = vadd.f32 %v1010_v57, %v1833_v19  ;;  %v1585_v60 = vpop.f32.mrb[33].mxu0 }
 0x726   :  { %v1013_v61 = vpop.f32.mrb[34].mxu0 }
 0x727   :  { %v1016_v63 = vmax.f32 %v1011_v58, 0.0  ;;  %v1586_v1 = vpop.f32.mrb[35].mxu0 }
 0x729   :  { %v1021_v2 = vmul.f32 %v1020_v59, %v1016_v63 }
 0x72b   :  { %v1022_v3 = vadd.f32 %v1021_v2, %v866_v29 }
 0x72c   :  { %v1119_v4 = vpop.f32.mrb[36].mxu0 }
 0x72d   :  { %v1120_v5 = vadd.f32 %v1119_v4, %v1770_v35  ;;  %v1599_v6 = vpop.f32.mrb[37].mxu0 }
 0x72e   :  { %v1122_v7 = vpop.f32.mrb[38].mxu0 }
 0x72f   :  { %v1123_v8 = vadd.f32 %v1122_v7, %v1773_v39  ;;  %v1600_v9 = vpop.f32.mrb[39].mxu0  ;;  %v1126_v10 = vmax.f32 %v1120_v5, 0.0 }
 0x731   :  { %v1127_v11 = vmax.f32 %v1123_v8, 0.0 }
 0x733   :  { %v1128_v12 = vpack.c.bf16 %v1127_v11, %v1126_v10 }
 0x734   :  { %v1231_v15 = vpop.f32.mrb[40].mxu0 }
 0x735   :  { %v1232_v16 = vadd.f32 %v1231_v15, %v1752_v14  ;;  %v1613_v17 = vpop.f32.mrb[41].mxu0  ;;  %v1130_v20 = vsel %vm192_vm4, %v1128_v12, 0  ;;  %v1028_v14 = vld [vmem:[%s2037_s1 + $0x6] sm:$0x1] }
 0x736   :  { %1602 = vmatpush3.bf16.msra.mxu1 %v1130_v20  ;;  %v1234_v24 = vpop.f32.mrb[42].mxu0  ;;  %v1176_v32 = vrot.slane %v1028_v14, %v1836_v21 }
 0x737   :  { %v1235_v25 = vadd.f32 %v1234_v24, %v1755_v18  ;;  %v1614_v27 = vpop.f32.mrb[43].mxu0  ;;  %1615 = vmatprep.subr.bf16.mxu1 %v1652_v0  ;;  %v1238_v28 = vmax.f32 %v1232_v16, 0.0 }
 0x739   :  { %v1239_v29 = vmax.f32 %v1235_v25, 0.0  ;;  %1604 = vmatmul.mubr.msk.bf16.vlgmr.msra.gmra.mrb[40].mxu1 %vm188_vm5, %v1780_v47 }
 0x73a   :  { %1617 = vmatprep.mubr.msk.bf16.mxu1 %vm1653_vm1, %v1652_v0 }
 0x73b   :  { %v1240_v30 = vpack.c.bf16 %v1239_v29, %v1238_v28 }
 0x73d   :  { %1616 = vmatpush3.bf16.msra.mxu1 %v1240_v30 }
 0x741   :  { %1618 = vmatmul.mubr.msk.bf16.vlgmr.msra.gmra.mrb[44].mxu1 %vm135_vm3, %v1761_v26 }
 0x80c   :  { %v1166_v18 = vpop.f32.mrb[40].mxu1 }
 0x80d   :  { %v1167_v31 = vadd.f32 %v1166_v18, %v1833_v19  ;;  %v1605_v33 = vpop.f32.mrb[41].mxu1 }
 0x80e   :  { %v1169_v34 = vpop.f32.mrb[42].mxu1 }
 0x80f   :  { %v1172_v36 = vmax.f32 %v1167_v31, 0.0  ;;  %v1606_v37 = vpop.f32.mrb[43].mxu1 }
 0x811   :  { %v1177_v38 = vmul.f32 %v1176_v32, %v1172_v36 }
 0x813   :  { %v1178_v0 = vadd.f32 %v1177_v38, %v1022_v3 }
 0x814   :  { %v1275_v40 = vpop.f32.mrb[44].mxu1 }
 0x815   :  { %v1276_v42 = vadd.f32 %v1275_v40, %v1770_v35  ;;  %v1619_v43 = vpop.f32.mrb[45].mxu1  ;;  %v711_v35 = vadd.f32 %v1920_v41, %v555_v52 }
 0x816   :  { %v1278_v26 = vpop.f32.mrb[46].mxu1 }
 0x817   :  { %v1279_v44 = vadd.f32 %v1278_v26, %v1773_v39  ;;  %v1620_v45 = vpop.f32.mrb[47].mxu1  ;;  %v1282_v46 = vmax.f32 %v1276_v42, 0.0  ;;  %v867_v53 = vadd.f32 %v1956_v13, %v711_v35 }
 0x819   :  { %v1283_v48 = vmax.f32 %v1279_v44, 0.0  ;;  %v1023_v39 = vadd.f32 %v872_v56, %v867_v53 }
 0x81b   :  { %v1284_v49 = vpack.c.bf16 %v1283_v48, %v1282_v46  ;;  %v1179_v54 = vadd.f32 %v1028_v14, %v1023_v39 }
 0x81d   :  { %v1286_v50 = vsel %vm192_vm4, %v1284_v49, 0  ;;  %v1335_v57 = vadd.f32 %v1184_v55, %v1179_v54 }
 0x81e   :  { %1622 = vmatpush3.bf16.msra.mxu0 %v1286_v50 }
 0x81f   :  { %v1336_v58 = vadd.f32 0.001, %v1335_v57 }
 0x821   :  { %1624 = vmatmul.mubr.msk.bf16.vlgmr.msra.gmra.mrb[44].mxu0 %vm188_vm5, %v1780_v47  ;;  %1650 = vrcp.f32 %v1336_v58 }
 0x82b   :  { %v1651_v62 = vpop.eup %1650 }
 0x82c   :  { %v1341_v56 = vrot.slane %v1651_v62, %v1836_v21 }
 0x8f4   :  { %v1322_v59 = vpop.f32.mrb[44].mxu0 }
 0x8f5   :  { %v1323_v47 = vadd.f32 %v1322_v59, %v1833_v19  ;;  %v1625_v23 = vpop.f32.mrb[45].mxu0 }
 0x8f6   :  { %v1325_v60 = vpop.f32.mrb[46].mxu0 }
 0x8f7   :  { %v1328_v41 = vmax.f32 %v1323_v47, 0.0  ;;  %v1626_v61 = vpop.f32.mrb[47].mxu0 }
 0x8f9   :  { %v1333_v13 = vmul.f32 %v1332_v22, %v1328_v41 }
 0x8fb   :  { %v1334_v63 = vadd.f32 %v1333_v13, %v1178_v0 }
 0x8fd   :  { %v1342_v1 = vmul.f32 %v1341_v56, %v1334_v63 }
 0x8ff   :  { %1343 = vst [vmem:[%s2038_s8] sm:$0xf] %v1342_v1 }

</bundles_post_ra>
